<compile_context>
chip_gen: v6e
topology: v6e:2x2x1
jax: 0.10.0
libtpu: 0.0.40
codegen_flags: <defaults>
</compile_context>

<pallas_src>
import functools

import jax
import jax.numpy as jnp
from jax.experimental import pallas as pl
from jax.experimental.pallas import tpu as pltpu


# ---------------------------------------------------------------------------
# Kernels
# ---------------------------------------------------------------------------

def _row_slab_kernel(kp_ref, vp_ref, k_ref, v_ref, ok_ref, ov_ref, *, bb, pd):
    """Primary path: one grid step moves a full-width slab of bb*h rows.

    kp_ref / vp_ref : (h, PD)        prefix params (constant block index -> VMEM resident)
    k_ref  / v_ref  : (rows, SD)     incoming key/value rows (rows = bb*h)
    ok_ref / ov_ref : (rows, PD+SD)  lane-dense concatenated outputs
    """
    ok_ref[:, :pd] = jnp.tile(kp_ref[...], (bb, 1)).astype(ok_ref.dtype)
    ok_ref[:, pd:] = k_ref[...]
    ov_ref[:, :pd] = jnp.tile(vp_ref[...], (bb, 1)).astype(ov_ref.dtype)
    ov_ref[:, pd:] = v_ref[...]


def _col_tiled_kernel(kp_ref, vp_ref, k_ref, v_ref, ok_ref, ov_ref, *, bb):
    """Fallback path: output columns tiled in chunks of PD lanes.

    Column chunk 0 of the output is the prefix; chunk c >= 1 is key/value
    column block c-1.  Every output block is written exactly once.
    """
    c = pl.program_id(1)

    @pl.when(c == 0)
    def _():
        ok_ref[...] = jnp.tile(kp_ref[...], (bb, 1)).astype(ok_ref.dtype)
        ov_ref[...] = jnp.tile(vp_ref[...], (bb, 1)).astype(ov_ref.dtype)

    @pl.when(c > 0)
    def _():
        ok_ref[...] = k_ref[...]
        ov_ref[...] = v_ref[...]


# ---------------------------------------------------------------------------
# Tiling / VMEM budgeting helpers
# ---------------------------------------------------------------------------

def _tpu_vmem_bytes():
    """Physical per-core VMEM; conservative default (v7x = 64 MiB) if unknown."""
    try:
        info = pltpu.get_tpu_info()
        cap = getattr(info, "vmem_capacity_bytes", None)
        if cap:
            return int(cap)
    except Exception:
        pass
    return 64 << 20


def _sublane_multiple(dtype):
    """Row-block granularity: 8 rows for 32-bit, 16 for bf16, 32 for int8/fp8."""
    itemsize = jnp.dtype(dtype).itemsize
    return 8 * max(1, 4 // itemsize)


def _vmem_limit(block_bytes, phys_vmem):
    """Explicit scoped-VMEM limit covering the double-buffered pipeline."""
    need = 2 * block_bytes + (2 << 20)           # 2x (inputs+outputs) + margin
    limit = max(need, 32 << 20)
    return int(min(limit, max(phys_vmem - (4 << 20), need)))


def _choose_block_batches(B, h, per_batch_bytes, slab_target, subl):
    """Largest whole-batch group whose slab fits the budget.

    Legality: row count (d*h) must be a multiple of the sublane granularity or
    cover the full B*h extent.  Preference among fitting choices: even grid
    extent (v7x megacore), then >=2 steps, then largest block.
    Returns (bb, fits_budget).
    """
    divisors = [d for d in range(1, B + 1) if B % d == 0]
    legal = [d for d in divisors if (d * h) % subl == 0 or d == B]
    fits = [d for d in legal if d * per_batch_bytes <= slab_target]
    if not fits:
        return min(legal), False
    even = [d for d in fits if (B // d) % 2 == 0]
    multi = [d for d in fits if B // d >= 2]
    pool = even or multi or fits
    return max(pool), True


# ---------------------------------------------------------------------------
# Forward wrapper
# ---------------------------------------------------------------------------

def prefix_forward(key, value, key_prefix_flat, value_prefix_flat, prefix_length,
                   *, slab_target_bytes=None):
    """key, value: (B, h, S, D_h); *_prefix_flat: (prefix_length*h*D_h,).

    Returns (new_key, new_value), each (B, h, prefix_length + S, D_h).
    """
    B, h, S, D_h = key.shape
    P = prefix_length
    PD = P * D_h          # prefix columns (lane-dense)
    SD = S * D_h          # key/value columns
    OD = PD + SD          # output columns

    k_dtype = key.dtype
    v_dtype = value.dtype
    itemsize = jnp.dtype(k_dtype).itemsize
    subl = _sublane_multiple(k_dtype)

    phys_vmem = _tpu_vmem_bytes()
    if slab_target_bytes is None:
        # Generation-aware: ~8 MiB/step on v7x (64 MiB VMEM), ~16 MiB on
        # v5e/v6e (128 MiB).  Double-buffered footprint ~2x this.
        slab_target_bytes = min(phys_vmem // 8, 16 << 20)

    # Lane-dense contiguous views (free reshapes).
    k2 = key.reshape(B * h, SD)
    v2 = value.reshape(B * h, SD)
    # torch's .view(B, h, P, D_h) of the flat (P*dim,) vector is head-major:
    # flat = hh*(P*D_h) + p*D_h + d  ->  rows of (h, P*D_h).
    kp = key_prefix_flat.astype(k_dtype).reshape(h, PD)
    vp = value_prefix_flat.astype(v_dtype).reshape(h, PD)

    out_shape = (
        jax.ShapeDtypeStruct((B * h, OD), k_dtype),
        jax.ShapeDtypeStruct((B * h, OD), v_dtype),
    )

    # ---- primary path sizing: full-width row slabs --------------------------
    per_batch_bytes = h * (2 * SD + 2 * OD) * itemsize
    bb, fits = _choose_block_batches(B, h, per_batch_bytes, slab_target_bytes, subl)

    # Column-tiled fallback only possible with a lane-aligned seam.  If the
    # seam is not 128-aligned we stay on the (correct, masked-store) row path.
    use_col_path = (not fits) and (PD % 128 == 0)

    if not use_col_path:
        rows = bb * h
        G = B // bb
        block_bytes = itemsize * (2 * h * PD + rows * (2 * SD + 2 * OD))
        grid = (G,)
        kernel = functools.partial(_row_slab_kernel, bb=bb, pd=PD)
        in_specs = [
            pl.BlockSpec((h, PD), lambda g: (0, 0)),      # prefix: VMEM resident
            pl.BlockSpec((h, PD), lambda g: (0, 0)),
            pl.BlockSpec((rows, SD), lambda g: (g, 0)),
            pl.BlockSpec((rows, SD), lambda g: (g, 0)),
        ]
        out_specs = (
            pl.BlockSpec((rows, OD), lambda g: (g, 0)),
            pl.BlockSpec((rows, OD), lambda g: (g, 0)),
        )
        dim_sem = ("parallel",)
    else:
        # Fallback: bound VMEM for small-B / large-S shapes.  Column tile = PD
        # (a multiple of 128), output column block c: c == 0 -> prefix,
        # c >= 1 -> key/value column block c-1.
        per_batch_bytes2 = h * 4 * PD * itemsize
        bb, _ = _choose_block_batches(B, h, per_batch_bytes2, slab_target_bytes, subl)
        rows = bb * h
        G = B // bb
        C = 1 + (SD + PD - 1) // PD
        block_bytes = itemsize * (2 * h * PD + rows * 4 * PD)
        grid = (G, C)
        kernel = functools.partial(_col_tiled_kernel, bb=bb)
        in_specs = [
            pl.BlockSpec((h, PD), lambda g, c: (0, 0)),
            pl.BlockSpec((h, PD), lambda g, c: (0, 0)),
            pl.BlockSpec((rows, PD), lambda g, c: (g, jnp.maximum(c - 1, 0))),
            pl.BlockSpec((rows, PD), lambda g, c: (g, jnp.maximum(c - 1, 0))),
        ]
        out_specs = (
            pl.BlockSpec((rows, PD), lambda g, c: (g, c)),
            pl.BlockSpec((rows, PD), lambda g, c: (g, c)),
        )
        dim_sem = ("parallel", "parallel")

    vmem_limit = _vmem_limit(block_bytes, phys_vmem)

    ok2, ov2 = pl.pallas_call(
        kernel,
        out_shape=out_shape,
        grid=grid,
        in_specs=in_specs,
        out_specs=out_specs,
        compiler_params=pltpu.CompilerParams(
            dimension_semantics=dim_sem,
            vmem_limit_bytes=vmem_limit,
        ),
    )(kp, vp, k2, v2)

    new_key = ok2.reshape(B, h, P + S, D_h)
    new_value = ov2.reshape(B, h, P + S, D_h)
    return new_key, new_value


# ---------------------------------------------------------------------------
# Demo / self-test
# ---------------------------------------------------------------------------

if __name__ == "__main__":
    # Small shapes consistent with the module.
    B, num_head, S, D_h = 2, 4, 8, 32
    dim = num_head * D_h          # 128
    prefix_length = 4             # PD = 128 (lane-aligned seam)

    root = jax.random.PRNGKey(0)
    k_key, k_val, k_kp, k_vp = jax.random.split(root, 4)

    key = jax.random.normal(k_key, (B, num_head, S, D_h), dtype=jnp.float32)
    value = jax.random.normal(k_val, (B, num_head, S, D_h), dtype=jnp.float32)
    key_prefix_flat = jax.random.normal(k_kp, (prefix_length * dim,), dtype=jnp.float32)
    value_prefix_flat = jax.random.normal(k_vp, (prefix_length * dim,), dtype=jnp.float32)

    def reference(k, v, kpf, vpf, P):
        b, hh, s, dh = k.shape
        kp_r = jnp.broadcast_to(kpf.reshape(1, hh, P, dh), (b, hh, P, dh))
        vp_r = jnp.broadcast_to(vpf.reshape(1, hh, P, dh), (b, hh, P, dh))
        return (jnp.concatenate([kp_r, k], axis=2),
                jnp.concatenate([vp_r, v], axis=2))

    ref_key, ref_value = reference(key, value, key_prefix_flat, value_prefix_flat,
                                   prefix_length)

    # Primary (row-slab) path at the natural generation-aware budget.
    new_key, new_value = prefix_forward(
        key, value, key_prefix_flat, value_prefix_flat, prefix_length)
    jax.block_until_ready((new_key, new_value))
    assert new_key.shape == (B, num_head, prefix_length + S, D_h)
    assert new_value.shape == (B, num_head, prefix_length + S, D_h)
    assert jnp.allclose(new_key, ref_key)
    assert jnp.allclose(new_value, ref_value)

    # Column-tiled fallback path, forced via a tiny slab budget so the
    # small-B / large-S VMEM-bounded path is also validated at small shapes.
    col_key, col_value = prefix_forward(
        key, value, key_prefix_flat, value_prefix_flat, prefix_length,
        slab_target_bytes=1 << 10)
    jax.block_until_ready((col_key, col_value))
    assert jnp.allclose(col_key, ref_key)
    assert jnp.allclose(col_value, ref_value)

    print("KERNEL_OK")
</pallas_src>

<mosaic_0001>
module attributes {stable_mosaic.version = 11 : i64} {
  func.func @_row_slab_kernel(%arg0: i32, %arg1: memref<4x128xf32, #tpu.memory_space<vmem>>, %arg2: memref<4x128xf32, #tpu.memory_space<vmem>>, %arg3: memref<8x256xf32, #tpu.memory_space<vmem>>, %arg4: memref<8x256xf32, #tpu.memory_space<vmem>>, %arg5: memref<8x384xf32, #tpu.memory_space<vmem>>, %arg6: memref<8x384xf32, #tpu.memory_space<vmem>>) attributes {dimension_semantics = [#tpu.dimension_semantics<parallel>], iteration_bounds = array<i64: 1>, scalar_prefetch = 0 : i64, scratch_operands = 0 : i64, tpu.core_type = #tpu.core_type<tc>, window_params = [{pipeline_mode = #tpu.pipeline_mode<synchronous>, transform_indices = @transform_0, window_bounds = array<i64: 4, 128>}, {pipeline_mode = #tpu.pipeline_mode<synchronous>, transform_indices = @transform_1, window_bounds = array<i64: 4, 128>}, {transform_indices = @transform_2, window_bounds = array<i64: 8, 256>}, {transform_indices = @transform_3, window_bounds = array<i64: 8, 256>}, {transform_indices = @transform_4, window_bounds = array<i64: 8, 384>}, {transform_indices = @transform_5, window_bounds = array<i64: 8, 384>}]} {
    %c0 = arith.constant 0 : index
    %c0_0 = arith.constant 0 : index
    %0 = vector.load %arg1[%c0, %c0_0] : memref<4x128xf32, #tpu.memory_space<vmem>>, vector<4x128xf32>
    %1 = tpu.concatenate %0, %0 in 0 : vector<4x128xf32>, vector<4x128xf32> -> vector<8x128xf32>
    %c0_1 = arith.constant 0 : index
    %c0_2 = arith.constant 0 : index
    %2 = vector.load %arg5[%c0_1, %c0_2] : memref<8x384xf32, #tpu.memory_space<vmem>>, vector<8x128xf32>
    tpu.vector_store %arg5[%c0_1, %c0_2], %1 {strides = array<i32>} : memref<8x384xf32, #tpu.memory_space<vmem>>, vector<8x128xf32>,
    %c0_3 = arith.constant 0 : index
    %c0_4 = arith.constant 0 : index
    %3 = vector.load %arg3[%c0_3, %c0_4] : memref<8x256xf32, #tpu.memory_space<vmem>>, vector<8x256xf32>
    %c0_5 = arith.constant 0 : index
    %c128 = arith.constant 128 : index
    %4 = vector.load %arg5[%c0_5, %c128] : memref<8x384xf32, #tpu.memory_space<vmem>>, vector<8x256xf32>
    tpu.vector_store %arg5[%c0_5, %c128], %3 {strides = array<i32>} : memref<8x384xf32, #tpu.memory_space<vmem>>, vector<8x256xf32>,
    %c0_6 = arith.constant 0 : index
    %c0_7 = arith.constant 0 : index
    %5 = vector.load %arg2[%c0_6, %c0_7] : memref<4x128xf32, #tpu.memory_space<vmem>>, vector<4x128xf32>
    %6 = tpu.concatenate %5, %5 in 0 : vector<4x128xf32>, vector<4x128xf32> -> vector<8x128xf32>
    %c0_8 = arith.constant 0 : index
    %c0_9 = arith.constant 0 : index
    %7 = vector.load %arg6[%c0_8, %c0_9] : memref<8x384xf32, #tpu.memory_space<vmem>>, vector<8x128xf32>
    tpu.vector_store %arg6[%c0_8, %c0_9], %6 {strides = array<i32>} : memref<8x384xf32, #tpu.memory_space<vmem>>, vector<8x128xf32>,
    %c0_10 = arith.constant 0 : index
    %c0_11 = arith.constant 0 : index
    %8 = vector.load %arg4[%c0_10, %c0_11] : memref<8x256xf32, #tpu.memory_space<vmem>>, vector<8x256xf32>
    %c0_12 = arith.constant 0 : index
    %c128_13 = arith.constant 128 : index
    %9 = vector.load %arg6[%c0_12, %c128_13] : memref<8x384xf32, #tpu.memory_space<vmem>>, vector<8x256xf32>
    tpu.vector_store %arg6[%c0_12, %c128_13], %8 {strides = array<i32>} : memref<8x384xf32, #tpu.memory_space<vmem>>, vector<8x256xf32>,
    return
  }
  func.func @transform_0(%arg0: i32) -> (i32, i32) {
    %c0_i32 = arith.constant 0 : i32
    %c0_i32_0 = arith.constant 0 : i32
    %c0_i32_1 = arith.constant 0 : i32
    return %c0_i32, %c0_i32_0 : i32, i32
  }
  func.func @transform_1(%arg0: i32) -> (i32, i32) {
    %c0_i32 = arith.constant 0 : i32
    %c0_i32_0 = arith.constant 0 : i32
    %c0_i32_1 = arith.constant 0 : i32
    return %c0_i32, %c0_i32_0 : i32, i32
  }
  func.func @transform_2(%arg0: i32) -> (i32, i32) {
    %c0_i32 = arith.constant 0 : i32
    %c0_i32_0 = arith.constant 0 : i32
    return %arg0, %c0_i32 : i32, i32
  }
  func.func @transform_3(%arg0: i32) -> (i32, i32) {
    %c0_i32 = arith.constant 0 : i32
    %c0_i32_0 = arith.constant 0 : i32
    return %arg0, %c0_i32 : i32, i32
  }
  func.func @transform_4(%arg0: i32) -> (i32, i32) {
    %c0_i32 = arith.constant 0 : i32
    %c0_i32_0 = arith.constant 0 : i32
    return %arg0, %c0_i32 : i32, i32
  }
  func.func @transform_5(%arg0: i32) -> (i32, i32) {
    %c0_i32 = arith.constant 0 : i32
    %c0_i32_0 = arith.constant 0 : i32
    return %arg0, %c0_i32 : i32, i32
  }
}

</mosaic_0001>

<bundles_post_ra>
// kernel: tpu_custom_call.1
= control target key start
LH: loop header
LB: loop body
LE: loop exit
PB: predicated region body
PF: predicated region fallthrough
CT: control target
= control target key end

     0   :  { %11 = vsyncpa [#allocation3], 0  ;;  %s312_s0 = inlined_call_operand.hbm [shape: f32[4,128], index: 0, kind: input, shape index: {}]   ;;  %s313_s1 = inlined_call_operand.hbm [shape: f32[4,128], index: 1, kind: input, shape index: {}]   ;;  %s314_s2 = inlined_call_operand.hbm [shape: f32[8,256], index: 2, kind: input, shape index: {}]   ;;  %s315_s3 = inlined_call_operand.hbm [shape: f32[8,256], index: 3, kind: input, shape index: {}]   ;;  %s316_s4 = inlined_call_operand.hbm [shape: f32[8,384], index: 4, kind: output, shape index: {0}]   ;;  %s317_s5 = inlined_call_operand.hbm [shape: f32[8,384], index: 5, kind: output, shape index: {1}]  }
   0x1   :  { %12 = vsyncpa [#allocation6], 0 }
   0x2   :  { %13 = vsyncpa [#allocation9], 0 }
   0x3   :  { %14 = vsyncpa [#allocation4], 0 }
   0x4   :  { %15 = vsyncpa [#allocation12], 0  ;;  %s256_s18 = smov [#allocation5]   ;;  %s257_s20 = smov [#allocation2]  }
   0x5   :  { %s32_s19 = sshll.u32 %s256_s18, 4  ;;  %s22_s21 = sshll.u32 %s257_s20, 4  ;;  %s33_s19 = int_to_ptr.vmem [resolvable:$true] %s32_s19  ;;  %s23_s21 = int_to_ptr.vmem [resolvable:$true] %s22_s21 }
   0x6   :  { %s134_s22 = scalar_lea.vmem %s33_s19, 64  ;;  %p139_p1 = scmp.lt.s32.totalorder %s33_s19, %s33_s19 }
   0x7   :  { %p135_p0 = scmp.ne.s32.totalorder %s33_s19, %s134_s22  ;;  %p140_p2 = scmp.lt.s32.totalorder %s134_s22, %s134_s22 }
   0x9   :  { %p141_p3 = por %p140_p2, %p139_p1 }
   0xb   :  { %p142_p4 = pnand %p141_p3, %p135_p0 }
   0xd   :  { %145 = shalt.err (!%p142_p4)
}
   0xe   :  { %35 = dma.hbm_to_vmem [thread:$0]  %s313_s1, 64, %s33_s19, [#allocation6]  }
   0xf   :  { %s154_s25 = scalar_lea.vmem %s23_s21, 64  ;;  %p159_p6 = scmp.lt.s32.totalorder %s23_s21, %s23_s21 }
  0x10   :  { %p155_p5 = scmp.ne.s32.totalorder %s23_s21, %s154_s25  ;;  %p160_p7 = scmp.lt.s32.totalorder %s154_s25, %s154_s25 }
  0x12   :  { %p161_p8 = por %p160_p7, %p159_p6 }
  0x14   :  { %p162_p9 = pnand %p161_p8, %p155_p5 }
  0x16   :  { %165 = shalt.err (!%p162_p9)
}
  0x17   :  { %25 = dma.hbm_to_vmem [thread:$0]  %s312_s0, 64, %s23_s21, [#allocation3]  }
  0x18   :  { %s258_s28 = smov [#allocation7]   ;;  %s259_s30 = smov [#allocation8]  }
  0x19   :  { %s42_s29 = sshll.u32 %s258_s28, 4  ;;  %s52_s6 = sshll.u32 %s259_s30, 4  ;;  %s43_s29 = int_to_ptr.vmem [resolvable:$true] %s42_s29  ;;  %s53_s6 = int_to_ptr.vmem [resolvable:$true] %s52_s6 }
  0x1a   :  { %s174_s7 = scalar_lea.vmem %s43_s29, 256  ;;  %p179_p11 = scmp.lt.s32.totalorder %s43_s29, %s43_s29 }
  0x1b   :  { %p175_p10 = scmp.ne.s32.totalorder %s43_s29, %s174_s7  ;;  %p180_p12 = scmp.lt.s32.totalorder %s174_s7, %s174_s7 }
  0x1d   :  { %p181_p13 = por %p180_p12, %p179_p11 }
  0x1f   :  { %p182_p0 = pnand %p181_p13, %p175_p10 }
  0x21   :  { %185 = shalt.err (!%p182_p0)
}
  0x22   :  { %45 = dma.hbm_to_vmem [thread:$0]  %s314_s2, 256, %s43_s29, [#allocation6]  }
  0x23   :  { %s194_s9 = scalar_lea.vmem %s53_s6, 256  ;;  %p199_p2 = scmp.lt.s32.totalorder %s53_s6, %s53_s6 }
  0x24   :  { %p195_p1 = scmp.ne.s32.totalorder %s53_s6, %s194_s9  ;;  %p200_p3 = scmp.lt.s32.totalorder %s194_s9, %s194_s9 }
  0x26   :  { %p201_p4 = por %p200_p3, %p199_p2 }
  0x28   :  { %p202_p5 = pnand %p201_p4, %p195_p1 }
  0x2a   :  { %205 = shalt.err (!%p202_p5)
}
  0x2b   :  { %55 = dma.hbm_to_vmem [thread:$0]  %s315_s3, 256, %s53_s6, [#allocation9]  }
  0x2c   :  { %246 = dma.done.wait [#allocation3], 64  }
  0x2d   :  { %247 = vsyncadd [#allocation3], 4294967232 }
  0x2e   :  { %248 = dma.done.wait [#allocation6], 320  }
  0x2f   :  { %249 = vsyncadd [#allocation6], 4294966976 }
  0x30   :  { %250 = dma.done.wait [#allocation9], 256  }
  0x31   :  { %251 = vsyncadd [#allocation9], 4294967040  ;;  %s260_s11 = smov [#allocation10]   ;;  %v68_v0 = vld [vmem:[#allocation2] sm:$0xf]  ;;  %vm72_vm0 = vcmask 1043456  }
  0x32   :  { %s95_s12 = sshll.u32 %s260_s11, 4  ;;  %v75_v1 = vld [vmem:[#allocation7] sm:$0xff]  ;;  %v76_v2 = vld [vmem:[#allocation7 + $0x8] sm:$0xff]  ;;  %s261_s2 = smov [#allocation11]   ;;  %v70_v3 = vrot.slane %v68_v0, 4  ;;  %v85_v5 = vld [vmem:[#allocation8] sm:$0xff]  ;;  %s96_s12 = int_to_ptr.vmem [resolvable:$true] %s95_s12 }
  0x33   :  { %s105_s13 = sshll.u32 %s261_s2, 4  ;;  %77 = vst [vmem:[#allocation10 + $0x8] sm:$0xff] %v75_v1  ;;  %78 = vst [vmem:[#allocation10 + $0x10] sm:$0xff] %v76_v2  ;;  %v79_v4 = vld [vmem:[#allocation5] sm:$0xf]  ;;  %s206_s3 = scalar_lea.vmem %s96_s12, 384  ;;  %s106_s13 = int_to_ptr.vmem [resolvable:$true] %s105_s13 }
  0x34   :  { %v86_v6 = vld [vmem:[#allocation8 + $0x8] sm:$0xff]  ;;  %v81_v7 = vrot.slane %v79_v4, 4  ;;  %87 = vst [vmem:[#allocation11 + $0x8] sm:$0xff] %v85_v5  ;;  %v73_v8 = vsel %vm72_vm0, %v68_v0, %v70_v3  ;;  %p207_p6 = scmp.ne.s32.totalorder %s96_s12, %s206_s3  ;;  %p211_p7 = scmp.lt.s32.totalorder %s96_s12, %s96_s12 }
  0x35   :  { %88 = vst [vmem:[#allocation11 + $0x10] sm:$0xff] %v86_v6  ;;  %74 = vst [vmem:[#allocation10] sm:$0xff] %v73_v8  ;;  %p212_p8 = scmp.lt.s32.totalorder %s206_s3, %s206_s3 }
  0x36   :  { %v83_v9 = vsel %vm72_vm0, %v79_v4, %v81_v7 }
  0x37   :  { %84 = vst [vmem:[#allocation11] sm:$0xff] %v83_v9  ;;  %p213_p9 = por %p212_p8, %p211_p7 }
  0x39   :  { %p214_p10 = pnand %p213_p9, %p207_p6 }
  0x3b   :  { %217 = shalt.err (!%p214_p10)
}
  0x3c   :  { %98 = dma.vmem_to_hbm [thread:$0]  %s96_s12, 384, %s316_s4, [#allocation4]  }
  0x3d   :  { %s226_s16 = scalar_lea.vmem %s106_s13, 384  ;;  %p231_p12 = scmp.lt.s32.totalorder %s106_s13, %s106_s13 }
  0x3e   :  { %p227_p11 = scmp.ne.s32.totalorder %s106_s13, %s226_s16  ;;  %p232_p13 = scmp.lt.s32.totalorder %s226_s16, %s226_s16 }
  0x40   :  { %p233_p0 = por %p232_p13, %p231_p12 }
  0x42   :  { %p234_p1 = pnand %p233_p0, %p227_p11 }
  0x44   :  { %237 = shalt.err (!%p234_p1)
}
  0x45   :  { %108 = dma.vmem_to_hbm [thread:$0]  %s106_s13, 384, %s317_s5, [#allocation12]  }
  0x46   :  { %252 = dma.done.wait [#allocation4], 384  }
  0x47   :  { %253 = vsyncadd [#allocation4], 4294966912 }
  0x48   :  { %254 = dma.done.wait [#allocation12], 384  }
  0x49   :  { %255 = vsyncadd [#allocation12], 4294966912 }
  0x4a   :  { %115 = vsyncpa [#allocation3], 1 }
  0x4b   :  { %116 = vsyncpa [#allocation6], 1 }
  0x4c   :  { %117 = vsyncpa [#allocation9], 1 }
  0x4d   :  { %118 = vsyncpa [#allocation4], 1 }
  0x4e   :  { %119 = vsyncpa [#allocation12], 1 }

</bundles_post_ra>
